<compile_context>
chip_gen: v7x
topology: tpu7x:2x2x1
jax: 0.10.0
libtpu: 0.0.40
codegen_flags: <defaults>
</compile_context>

<pallas_src>
import jax
import jax.numpy as jnp
from jax.experimental import pallas as pl
from jax.experimental.pallas import tpu as pltpu

HID1 = 128   # fc1 width (fixed by the module)
HID2 = 64    # fc2 width (fixed by the module)
LANES = 128  # TPU lane width


def _round_up(n, m):
    return (n + m - 1) // m * m


def qnetwork_kernel(x_ref, w1_ref, w2_ref, w3_ref, b_ref, o_ref):
    """One (TB, in) activation tile -> one (out_rows, TB) transposed Q-tile.

    Weights are full-array blocks (index_map -> (0, 0)) and stay resident in
    VMEM across grid steps.  Biases are packed into a single (3, cols) f32
    array: row 0 = b1, row 1 = b2 (first HID2 cols), row 2 = b3 (zero-padded
    to the padded fc3 width).  The final tile is transposed so the batch is
    the lane axis and only the useful output rows are written back.
    """
    hid1 = w1_ref.shape[1]
    hid2 = w2_ref.shape[1]
    out_cols = w3_ref.shape[1]       # padded fc3 width (multiple of 128)
    out_rows = o_ref.shape[0]        # round_up(out_dim, 8)

    # fc1 + relu (MXU matmul, f32 accumulation; bias/ReLU in f32)
    x = x_ref[...].astype(w1_ref.dtype)
    h1 = jnp.dot(x, w1_ref[...], preferred_element_type=jnp.float32)
    h1 = jnp.maximum(h1 + b_ref[0:1, :hid1], 0.0)

    # fc2 + relu
    h2 = jnp.dot(h1.astype(w2_ref.dtype), w2_ref[...],
                 preferred_element_type=jnp.float32)
    h2 = jnp.maximum(h2 + b_ref[1:2, :hid2], 0.0)

    # fc3 (no activation), full 128-lane MXU tile, then transpose on the XLU
    # and keep only the useful rows -> (out_rows, TB) lane-dense store.
    out = jnp.dot(h2.astype(w3_ref.dtype), w3_ref[...],
                  preferred_element_type=jnp.float32)
    out = out + b_ref[2:3, :out_cols]            # (TB, out_cols) f32
    out_t = out.T                                # (out_cols, TB), XLU transpose
    o_ref[...] = out_t[:out_rows, :].astype(o_ref.dtype)


def prepare_qnetwork_params(params, param_dtype=jnp.bfloat16):
    """One-time parameter massaging (hoisted out of the per-call path).

    Returns a dict with: w1 (in,128), w2 (128,64), w3p (64, out_cols) in
    `param_dtype`, b_pack (3, cols) f32, and static ints out_dim/out_rows.
    """
    w1 = jnp.asarray(params["w1"]).astype(param_dtype)
    w2 = jnp.asarray(params["w2"]).astype(param_dtype)
    w3 = jnp.asarray(params["w3"])
    out_dim = w3.shape[1]
    out_rows = _round_up(max(out_dim, 1), 8)          # sublane-aligned rows written
    out_cols = _round_up(max(out_dim, 1), LANES)      # lane-aligned fc3 matmul width
    bias_cols = max(LANES, out_cols)

    w3p = jnp.zeros((HID2, out_cols), param_dtype).at[:, :out_dim].set(
        w3.astype(param_dtype))

    b_pack = jnp.zeros((3, bias_cols), jnp.float32)
    b_pack = b_pack.at[0, :HID1].set(jnp.asarray(params["b1"], jnp.float32).reshape(-1))
    b_pack = b_pack.at[1, :HID2].set(jnp.asarray(params["b2"], jnp.float32).reshape(-1))
    b_pack = b_pack.at[2, :out_dim].set(jnp.asarray(params["b3"], jnp.float32).reshape(-1))

    return {"w1": w1, "w2": w2, "w3p": w3p, "b_pack": b_pack,
            "out_dim": out_dim, "out_rows": out_rows}


def qnetwork_forward(x, prep, *, block_b=1024):
    """x: (B, input_dim) float. prep: output of prepare_qnetwork_params().
    Returns (B, out_dim) float32 Q-values.

    block_b may be raised to 2048-4096 on v5e for large training batches;
    VMEM stays well under the scoped limit either way."""
    w1, w2, w3p, b_pack = prep["w1"], prep["w2"], prep["w3p"], prep["b_pack"]
    out_dim, out_rows = prep["out_dim"], prep["out_rows"]
    in_dim = x.shape[1]
    B = x.shape[0]

    # Cast activations once in the wrapper (halves activation DMA for bf16).
    if x.dtype != w1.dtype:
        x = x.astype(w1.dtype)

    # Batch tile: multiple of 128 (it becomes the lane axis of the transposed
    # output), capped so there are >=2 grid steps whenever B allows, so the
    # "parallel" axis actually uses both TensorCores on v7x.
    tb = _round_up(min(block_b, max(B, 1)), LANES)
    if B > LANES:
        tb = min(tb, _round_up((B + 1) // 2, LANES))
    tb = max(tb, LANES)

    if B < tb:
        # Tiny batches only: cheap zero-pad so one full block covers the array.
        x = jnp.pad(x, ((0, tb - B), (0, 0)))
        n_cols = tb
    else:
        # No wrapper pad: Pallas pads OOB reads / masks OOB writes of the
        # partial final block.
        n_cols = B

    grid = (pl.cdiv(n_cols, tb),)

    flops = 2 * n_cols * (in_dim * HID1 + HID1 * HID2 + HID2 * w3p.shape[1])
    bytes_accessed = (
        x.size * x.dtype.itemsize
        + w1.size * w1.dtype.itemsize
        + w2.size * w2.dtype.itemsize
        + w3p.size * w3p.dtype.itemsize
        + b_pack.size * b_pack.dtype.itemsize
        + out_rows * n_cols * 4)

    out = pl.pallas_call(
        qnetwork_kernel,
        out_shape=jax.ShapeDtypeStruct((out_rows, n_cols), jnp.float32),
        grid_spec=pl.GridSpec(
            grid=grid,
            in_specs=[
                pl.BlockSpec((tb, in_dim), lambda i: (i, 0)),   # activations: tiled
                pl.BlockSpec(w1.shape, lambda i: (0, 0)),       # weights: resident
                pl.BlockSpec(w2.shape, lambda i: (0, 0)),
                pl.BlockSpec(w3p.shape, lambda i: (0, 0)),
                pl.BlockSpec(b_pack.shape, lambda i: (0, 0)),   # packed biases
            ],
            out_specs=pl.BlockSpec((out_rows, tb), lambda i: (0, i)),  # transposed, narrow
        ),
        compiler_params=pltpu.CompilerParams(
            dimension_semantics=("parallel",)),
        cost_estimate=pl.CostEstimate(
            flops=flops, transcendentals=0, bytes_accessed=bytes_accessed),
    )(x, w1, w2, w3p, b_pack)

    # (out_rows, n_cols) -> (B, out_dim); the sliced transpose is a few KB.
    return out[:out_dim, :B].T


def init_qnetwork_params(key, input_dim, output_dim):
    """Deterministic init mimicking torch.nn.Linear's U(-1/sqrt(fan_in), +1/sqrt(fan_in))."""
    dims = [(input_dim, HID1), (HID1, HID2), (HID2, output_dim)]
    params = {}
    for i, (fan_in, fan_out) in enumerate(dims, start=1):
        key, kw, kb = jax.random.split(key, 3)
        bound = 1.0 / jnp.sqrt(float(fan_in))
        params[f"w{i}"] = jax.random.uniform(
            kw, (fan_in, fan_out), jnp.float32, minval=-bound, maxval=bound)
        params[f"b{i}"] = jax.random.uniform(
            kb, (1, fan_out), jnp.float32, minval=-bound, maxval=bound)
    return params


def qnetwork_reference(x, params):
    h1 = jnp.maximum(x @ params["w1"] + params["b1"], 0.0)
    h2 = jnp.maximum(h1 @ params["w2"] + params["b2"], 0.0)
    return h2 @ params["w3"] + params["b3"]


if __name__ == "__main__":
    key = jax.random.PRNGKey(0)
    key, kx1, kx2, kp = jax.random.split(key, 4)

    input_dim = 32   # small state-feature vector
    output_dim = 6   # number of actions (up/down/left/right/wait/bomb)
    params = init_qnetwork_params(kp, input_dim, output_dim)

    # One-time parameter preparation (f32 for tight checks, bf16 = fast default).
    prep_f32 = prepare_qnetwork_params(params, param_dtype=jnp.float32)
    prep_bf16 = prepare_qnetwork_params(params, param_dtype=jnp.bfloat16)

    # Small batch: single (padded) tile, grid of 1, f32 path -> tight tolerance.
    x_small = jax.random.normal(kx1, (8, input_dim), jnp.float32)
    out_small = jax.block_until_ready(qnetwork_forward(x_small, prep_f32))
    ref_small = qnetwork_reference(x_small, params)
    assert out_small.shape == (8, output_dim)
    assert jnp.allclose(out_small, ref_small, atol=1e-5, rtol=1e-5)

    # Training-sized, non-multiple batch: 2 grid steps (v7x dual-TC), no wrapper
    # pad, masked partial final block, transposed narrow output.
    x_big = jax.random.normal(kx2, (1000, input_dim), jnp.float32)
    out_big = jax.block_until_ready(qnetwork_forward(x_big, prep_f32, block_b=512))
    ref_big = qnetwork_reference(x_big, params)
    assert out_big.shape == (1000, output_dim)
    assert jnp.allclose(out_big, ref_big, atol=1e-4, rtol=1e-4)

    # Default bf16 weights+activations (v6e/v7x fast path), f32 accumulation.
    out_bf16 = jax.block_until_ready(qnetwork_forward(x_big, prep_bf16, block_b=512))
    assert out_bf16.shape == (1000, output_dim)
    assert jnp.allclose(out_bf16, ref_big, atol=1e-1, rtol=1e-1)

    print("KERNEL_OK")
</pallas_src>

<mosaic_0001>
module attributes {stable_mosaic.version = 11 : i64} {
  func.func @qnetwork_kernel(%arg0: i32, %arg1: memref<128x32xf32, #tpu.memory_space<vmem>>, %arg2: memref<32x128xf32, #tpu.memory_space<vmem>>, %arg3: memref<128x64xf32, #tpu.memory_space<vmem>>, %arg4: memref<64x128xf32, #tpu.memory_space<vmem>>, %arg5: memref<3x128xf32, #tpu.memory_space<vmem>>, %arg6: memref<8x128xf32, #tpu.memory_space<vmem>>) attributes {dimension_semantics = [#tpu.dimension_semantics<parallel>], iteration_bounds = array<i64: 1>, scalar_prefetch = 0 : i64, scratch_operands = 0 : i64, tpu.core_type = #tpu.core_type<tc>, window_params = [{transform_indices = @transform_0, window_bounds = array<i64: 128, 32>}, {pipeline_mode = #tpu.pipeline_mode<synchronous>, transform_indices = @transform_1, window_bounds = array<i64: 32, 128>}, {pipeline_mode = #tpu.pipeline_mode<synchronous>, transform_indices = @transform_2, window_bounds = array<i64: 128, 64>}, {pipeline_mode = #tpu.pipeline_mode<synchronous>, transform_indices = @transform_3, window_bounds = array<i64: 64, 128>}, {pipeline_mode = #tpu.pipeline_mode<synchronous>, transform_indices = @transform_4, window_bounds = array<i64: 3, 128>}, {transform_indices = @transform_5, window_bounds = array<i64: 8, 128>}]} {
    %c0 = arith.constant 0 : index
    %c0_0 = arith.constant 0 : index
    %0 = vector.load %arg1[%c0, %c0_0] : memref<128x32xf32, #tpu.memory_space<vmem>>, vector<128x32xf32>
    %c0_1 = arith.constant 0 : index
    %c0_2 = arith.constant 0 : index
    %1 = vector.load %arg2[%c0_1, %c0_2] : memref<32x128xf32, #tpu.memory_space<vmem>>, vector<32x128xf32>
    %cst = arith.constant dense<0.000000e+00> : vector<128x128xf32>
    %2 = tpu.matmul %0, %1, %cst {dimension_numbers = #tpu.dot_dimension_numbers<[1], [0], [0], [1], [0, 0, 1, 1], [], []>} : vector<128x32xf32>, vector<32x128xf32>, vector<128x128xf32> -> vector<128x128xf32>
    %c0_3 = arith.constant 0 : index
    %c0_4 = arith.constant 0 : index
    %3 = vector.load %arg5[%c0_3, %c0_4] : memref<3x128xf32, #tpu.memory_space<vmem>>, vector<1x128xf32>
    %4 = vector.broadcast %3 : vector<1x128xf32> to vector<128x128xf32>
    %5 = arith.addf %2, %4 : vector<128x128xf32>
    %cst_5 = arith.constant 0.000000e+00 : f32
    %6 = vector.broadcast %cst_5 : f32 to vector<128x128xf32>
    %7 = arith.maximumf %5, %6 : vector<128x128xf32>
    %c0_6 = arith.constant 0 : index
    %c0_7 = arith.constant 0 : index
    %8 = vector.load %arg3[%c0_6, %c0_7] : memref<128x64xf32, #tpu.memory_space<vmem>>, vector<128x64xf32>
    %cst_8 = arith.constant dense<0.000000e+00> : vector<128x64xf32>
    %9 = tpu.matmul %7, %8, %cst_8 {dimension_numbers = #tpu.dot_dimension_numbers<[1], [0], [0], [1], [0, 0, 1, 1], [], []>} : vector<128x128xf32>, vector<128x64xf32>, vector<128x64xf32> -> vector<128x64xf32>
    %c1 = arith.constant 1 : index
    %c0_9 = arith.constant 0 : index
    %10 = vector.load %arg5[%c1, %c0_9] : memref<3x128xf32, #tpu.memory_space<vmem>>, vector<1x64xf32>
    %11 = vector.broadcast %10 : vector<1x64xf32> to vector<128x64xf32>
    %12 = arith.addf %9, %11 : vector<128x64xf32>
    %cst_10 = arith.constant 0.000000e+00 : f32
    %13 = vector.broadcast %cst_10 : f32 to vector<128x64xf32>
    %14 = arith.maximumf %12, %13 : vector<128x64xf32>
    %c0_11 = arith.constant 0 : index
    %c0_12 = arith.constant 0 : index
    %15 = vector.load %arg4[%c0_11, %c0_12] : memref<64x128xf32, #tpu.memory_space<vmem>>, vector<64x128xf32>
    %cst_13 = arith.constant dense<0.000000e+00> : vector<128x128xf32>
    %16 = tpu.matmul %14, %15, %cst_13 {dimension_numbers = #tpu.dot_dimension_numbers<[1], [0], [0], [1], [0, 0, 1, 1], [], []>} : vector<128x64xf32>, vector<64x128xf32>, vector<128x128xf32> -> vector<128x128xf32>
    %c2 = arith.constant 2 : index
    %c0_14 = arith.constant 0 : index
    %17 = vector.load %arg5[%c2, %c0_14] : memref<3x128xf32, #tpu.memory_space<vmem>>, vector<1x128xf32>
    %18 = vector.broadcast %17 : vector<1x128xf32> to vector<128x128xf32>
    %19 = arith.addf %16, %18 : vector<128x128xf32>
    %20 = tpu.transpose %19, [1, 0] : vector<128x128xf32> -> vector<128x128xf32>
    %21 = vector.extract_strided_slice %20 {offsets = [0, 0], sizes = [8, 128], strides = [1, 1]} : vector<128x128xf32> to vector<8x128xf32>
    %c0_15 = arith.constant 0 : index
    %c0_16 = arith.constant 0 : index
    %22 = vector.load %arg6[%c0_15, %c0_16] : memref<8x128xf32, #tpu.memory_space<vmem>>, vector<8x128xf32>
    tpu.vector_store %arg6[%c0_15, %c0_16], %21 {strides = array<i32>} : memref<8x128xf32, #tpu.memory_space<vmem>>, vector<8x128xf32>,
    return
  }
  func.func @transform_0(%arg0: i32) -> (i32, i32) {
    %c0_i32 = arith.constant 0 : i32
    %c0_i32_0 = arith.constant 0 : i32
    return %arg0, %c0_i32 : i32, i32
  }
  func.func @transform_1(%arg0: i32) -> (i32, i32) {
    %c0_i32 = arith.constant 0 : i32
    %c0_i32_0 = arith.constant 0 : i32
    %c0_i32_1 = arith.constant 0 : i32
    return %c0_i32, %c0_i32_0 : i32, i32
  }
  func.func @transform_2(%arg0: i32) -> (i32, i32) {
    %c0_i32 = arith.constant 0 : i32
    %c0_i32_0 = arith.constant 0 : i32
    %c0_i32_1 = arith.constant 0 : i32
    return %c0_i32, %c0_i32_0 : i32, i32
  }
  func.func @transform_3(%arg0: i32) -> (i32, i32) {
    %c0_i32 = arith.constant 0 : i32
    %c0_i32_0 = arith.constant 0 : i32
    %c0_i32_1 = arith.constant 0 : i32
    return %c0_i32, %c0_i32_0 : i32, i32
  }
  func.func @transform_4(%arg0: i32) -> (i32, i32) {
    %c0_i32 = arith.constant 0 : i32
    %c0_i32_0 = arith.constant 0 : i32
    %c0_i32_1 = arith.constant 0 : i32
    return %c0_i32, %c0_i32_0 : i32, i32
  }
  func.func @transform_5(%arg0: i32) -> (i32, i32) {
    %c0_i32 = arith.constant 0 : i32
    %c0_i32_0 = arith.constant 0 : i32
    return %c0_i32, %arg0 : i32, i32
  }
}

</mosaic_0001>

<bundles_post_ra>
// kernel: tpu_custom_call.1
= control target key start
LH: loop header
LB: loop body
LE: loop exit
PB: predicated region body
PF: predicated region fallthrough
CT: control target
= control target key end

     0   :  { %vm46_vm0 = vcmask 261120   ;;  %s1254_s0 = inlined_call_operand.vmem [shape: f32[128,32], index: 0, kind: input, shape index: {}]   ;;  %s1255_s1 = inlined_call_operand.vmem [shape: f32[32,128], index: 1, kind: input, shape index: {}]   ;;  %s1256_s2 = inlined_call_operand.vmem [shape: f32[128,64], index: 2, kind: input, shape index: {}]   ;;  %s1257_s3 = inlined_call_operand.vmem [shape: f32[64,128], index: 3, kind: input, shape index: {}]   ;;  %s1258_s4 = inlined_call_operand.vmem [shape: f32[3,128], index: 4, kind: input, shape index: {}]   ;;  %s1259_s5 = inlined_call_operand.hbm [shape: f32[8,128], index: 5, kind: output, shape index: {}]  }
   0x1   :  { %v37_v0 = vld [vmem:[%s1255_s1] sm:$0xff]  ;;  %v38_v1 = vld [vmem:[%s1255_s1 + $0x8] sm:$0xff]  ;;  %v39_v2 = vld [vmem:[%s1255_s1 + $0x10] sm:$0xff] }
   0x2   :  { %v931_v3 = vpack.c.bf16 %v38_v1, %v37_v0  ;;  %v40_v4 = vld [vmem:[%s1255_s1 + $0x18] sm:$0xff]  ;;  %v21_v5 = vld [vmem:[%s1254_s0] sm:$0xff]  ;;  %v257_v8 = vld [vmem:[%s1256_s2 + $0x8] sm:$0xff] }
   0x3   :  { %v935_v6 = vpack.c.bf16 %v40_v4, %v39_v2  ;;  %811 = vmatprep.mubr.msk.f32.mxu0 %vm46_vm0, %v21_v5  ;;  %v256_v7 = vld [vmem:[%s1256_s2] sm:$0xff]  ;;  %v258_v9 = vld [vmem:[%s1256_s2 + $0x10] sm:$0xff]  ;;  %v259_v10 = vld [vmem:[%s1256_s2 + $0x18] sm:$0xff] }
   0x4   :  { %932 = vmatprep.subr.bf16.mxu0 %v931_v3  ;;  %v22_v11 = vld [vmem:[%s1254_s0 + $0x8] sm:$0xff]  ;;  %v939_v12 = vpack.c.bf16 %v257_v8, %v256_v7  ;;  %v943_v13 = vpack.c.bf16 %v259_v10, %v258_v9  ;;  %v23_v14 = vld [vmem:[%s1254_s0 + $0x10] sm:$0xff]  ;;  %v260_v15 = vld [vmem:[%s1256_s2 + $0x20] sm:$0xff] }
   0x5   :  { %934 = vmatpush3.bf16.msra.mxu0 %v931_v3  ;;  %v261_v16 = vld [vmem:[%s1256_s2 + $0x28] sm:$0xff] }
   0x6   :  { %936 = vmatprep.subr.bf16.mxu0 %v935_v6  ;;  %940 = vmatprep.subr.bf16.mxu1 %v939_v12 }
   0x7   :  { %942 = vmatpush3.bf16.msra.mxu1 %v939_v12 }
   0x9   :  { %938 = vmatpush3.bf16.msra.mxu0 %v935_v6 }
   0xc   :  { %812 = vmatmul.mubr.msk.f32.vlgmr.msra.gmra.mrb[0].mxu0 %vm46_vm0, %v22_v11 }
   0xd   :  { %10 = vsyncpa [#allocation3], 0  ;;  %814 = vmatprep.mubr.msk.f32.mxu0 %vm46_vm0, %v23_v14  ;;  %v24_v17 = vld [vmem:[%s1254_s0 + $0x18] sm:$0xff]  ;;  %944 = vmatprep.subr.bf16.mxu1 %v943_v13  ;;  %v947_v18 = vpack.c.bf16 %v261_v16, %v260_v15  ;;  %v25_v19 = vld [vmem:[%s1254_s0 + $0x20] sm:$0xff]  ;;  %vm451_vm1 = vcmask 523264  }
   0xe   :  { %v262_v20 = vld [vmem:[%s1256_s2 + $0x30] sm:$0xff]  ;;  %v263_v21 = vld [vmem:[%s1256_s2 + $0x38] sm:$0xff]  ;;  %946 = vmatpush3.bf16.msra.mxu1 %v943_v13  ;;  %v26_v22 = vld [vmem:[%s1254_s0 + $0x28] sm:$0xff] }
   0xf   :  { %948 = vmatprep.subr.bf16.mxu1 %v947_v18  ;;  %v951_v23 = vpack.c.bf16 %v263_v21, %v262_v20  ;;  %v27_v24 = vld [vmem:[%s1254_s0 + $0x30] sm:$0xff]  ;;  %v264_v25 = vld [vmem:[%s1256_s2 + $0x40] sm:$0xff]  ;;  %v265_v26 = vld [vmem:[%s1256_s2 + $0x48] sm:$0xff] }
  0x10   :  { %815 = vmatmul.mubr.msk.f32.gmra.mrb[2].mxu0 %vm46_vm0, %v24_v17  ;;  %v28_v27 = vld [vmem:[%s1254_s0 + $0x38] sm:$0xff]  ;;  %v955_v28 = vpack.c.bf16 %v265_v26, %v264_v25  ;;  %v29_v29 = vld [vmem:[%s1254_s0 + $0x40] sm:$0xff]  ;;  %v266_v30 = vld [vmem:[%s1256_s2 + $0x50] sm:$0xff] }
  0x11   :  { %817 = vmatprep.mubr.msk.f32.mxu0 %vm46_vm0, %v25_v19  ;;  %v267_v31 = vld [vmem:[%s1256_s2 + $0x58] sm:$0xff]  ;;  %v30_v32 = vld [vmem:[%s1254_s0 + $0x48] sm:$0xff]  ;;  %v31_v34 = vld [vmem:[%s1254_s0 + $0x50] sm:$0xff] }
  0x12   :  { %950 = vmatpush3.bf16.msra.mxu1 %v947_v18  ;;  %v959_v33 = vpack.c.bf16 %v267_v31, %v266_v30  ;;  %v268_v35 = vld [vmem:[%s1256_s2 + $0x60] sm:$0xff]  ;;  %v269_v36 = vld [vmem:[%s1256_s2 + $0x68] sm:$0xff]  ;;  %v32_v37 = vld [vmem:[%s1254_s0 + $0x58] sm:$0xff] }
  0x13   :  { %952 = vmatprep.subr.bf16.mxu1 %v951_v23  ;;  %v963_v38 = vpack.c.bf16 %v269_v36, %v268_v35  ;;  %v33_v39 = vld [vmem:[%s1254_s0 + $0x60] sm:$0xff]  ;;  %v34_v40 = vld [vmem:[%s1254_s0 + $0x68] sm:$0xff]  ;;  %v35_v41 = vld [vmem:[%s1254_s0 + $0x70] sm:$0xff] }
  0x14   :  { %818 = vmatmul.mubr.msk.f32.gmra.mrb[4].mxu0 %vm46_vm0, %v26_v22  ;;  %v36_v42 = vld [vmem:[%s1254_s0 + $0x78] sm:$0xff]  ;;  %v270_v43 = vld [vmem:[%s1256_s2 + $0x70] sm:$0xff]  ;;  %v438_v46 = vld [vmem:[%s1257_s3] sm:$0xff] }
  0x15   :  { %820 = vmatprep.mubr.msk.f32.mxu0 %vm46_vm0, %v27_v24  ;;  %v271_v44 = vld [vmem:[%s1256_s2 + $0x78] sm:$0xff]  ;;  %v439_v47 = vld [vmem:[%s1257_s3 + $0x8] sm:$0xff]  ;;  %v440_v48 = vld [vmem:[%s1257_s3 + $0x10] sm:$0xff] }
  0x16   :  { %954 = vmatpush3.bf16.msra.mxu1 %v951_v23  ;;  %v967_v45 = vpack.c.bf16 %v271_v44, %v270_v43  ;;  %v971_v49 = vpack.c.bf16 %v439_v47, %v438_v46  ;;  %v441_v50 = vld [vmem:[%s1257_s3 + $0x18] sm:$0xff]  ;;  %v442_v52 = vld [vmem:[%s1257_s3 + $0x20] sm:$0xff]  ;;  %v443_v53 = vld [vmem:[%s1257_s3 + $0x28] sm:$0xff] }
  0x17   :  { %956 = vmatprep.subr.bf16.mxu1 %v955_v28  ;;  %v975_v51 = vpack.c.bf16 %v441_v50, %v440_v48  ;;  %v979_v54 = vpack.c.bf16 %v443_v53, %v442_v52  ;;  %v444_v55 = vld [vmem:[%s1257_s3 + $0x30] sm:$0xff]  ;;  %v445_v56 = vld [vmem:[%s1257_s3 + $0x38] sm:$0xff]  ;;  %v1202_v58 = vld [vmem:[%s1258_s4] ss:$0 sm:$0xff] }
  0x18   :  { %821 = vmatmul.mubr.msk.f32.gmra.mrb[6].mxu0 %vm46_vm0, %v28_v27  ;;  %972 = vmatprep.subr.bf16.mxu0 %v971_v49  ;;  %v983_v57 = vpack.c.bf16 %v445_v56, %v444_v55  ;;  %v709_v43 = vld [vmem:[%s1258_s4 + $0x1] ss:$0 sm:$0xff] }
  0x19   :  { %823 = vmatprep.mubr.msk.f32.mxu0 %vm46_vm0, %v29_v29  ;;  %974 = vmatpush3.bf16.msra.mxu0 %v971_v49 }
  0x1a   :  { %958 = vmatpush3.bf16.msra.mxu1 %v955_v28  ;;  %976 = vmatprep.subr.bf16.mxu0 %v975_v51 }
  0x1b   :  { %960 = vmatprep.subr.bf16.mxu1 %v959_v33 }
  0x1c   :  { %824 = vmatmul.mubr.msk.f32.gmra.mrb[8].mxu0 %vm46_vm0, %v30_v32 }
  0x1d   :  { %826 = vmatprep.mubr.msk.f32.mxu0 %vm46_vm0, %v31_v34  ;;  %978 = vmatpush3.bf16.msra.mxu0 %v975_v51 }
  0x1e   :  { %962 = vmatpush3.bf16.msra.mxu1 %v959_v33  ;;  %980 = vmatprep.subr.bf16.mxu0 %v979_v54 }
  0x1f   :  { %964 = vmatprep.subr.bf16.mxu1 %v963_v38 }
  0x20   :  { %827 = vmatmul.mubr.msk.f32.gmra.mrb[10].mxu0 %vm46_vm0, %v32_v37 }
  0x21   :  { %829 = vmatprep.mubr.msk.f32.mxu0 %vm46_vm0, %v33_v39  ;;  %982 = vmatpush3.bf16.msra.mxu0 %v979_v54 }
  0x22   :  { %966 = vmatpush3.bf16.msra.mxu1 %v963_v38  ;;  %984 = vmatprep.subr.bf16.mxu0 %v983_v57 }
  0x23   :  { %968 = vmatprep.subr.bf16.mxu1 %v967_v45 }
  0x24   :  { %830 = vmatmul.mubr.msk.f32.gmra.mrb[12].mxu0 %vm46_vm0, %v34_v40 }
  0x25   :  { %832 = vmatprep.mubr.msk.f32.mxu0 %vm46_vm0, %v35_v41  ;;  %986 = vmatpush3.bf16.msra.mxu0 %v983_v57 }
  0x26   :  { %970 = vmatpush3.bf16.msra.mxu1 %v967_v45 }
  0x27   :  { %987 = vmatprep.subr.bf16.mxu1 %v971_v49 }
  0x28   :  { %833 = vmatmul.mubr.msk.f32.gmra.mrb[14].mxu0 %vm46_vm0, %v36_v42 }
  0xdf   :  { %v813_v59 = vpop.f32.mrb[0].mxu0 }
  0xe0   :  { %v167_v60 = vadd.f32 %v813_v59, %v1202_v58  ;;  %v161_v61 = vpop.f32.mrb[1].mxu0 }
  0xe1   :  { %v162_v62 = vadd.f32 %v1202_v58, %v161_v61 }
  0xe2   :  { %v241_v1 = vmax.f32 %v167_v60, 0.0 }
  0xe3   :  { %v816_v63 = vpop.f32.mrb[2].mxu0  ;;  %v240_v0 = vmax.f32 %v162_v62, 0.0 }
  0xe4   :  { %v177_v2 = vadd.f32 %v816_v63, %v1202_v58  ;;  %v171_v3 = vpop.f32.mrb[3].mxu0 }
  0xe5   :  { %v172_v4 = vadd.f32 %v1202_v58, %v171_v3  ;;  %867 = vmatprep.mubr.f32.mxu1 %v240_v0 }
  0xe6   :  { %v243_v5 = vmax.f32 %v177_v2, 0.0  ;;  %868 = vmatmul.mubr.f32.vlgmr.msra.gmra.mrb[0].mxu1 %v241_v1 }
  0xe7   :  { %v242_v6 = vmax.f32 %v172_v4, 0.0  ;;  %v819_v7 = vpop.f32.mrb[4].mxu0  ;;  %991 = vmatpush3.bf16.msra.mxu1 %v971_v49 }
  0xe8   :  { %v187_v8 = vadd.f32 %v819_v7, %v1202_v58  ;;  %v181_v9 = vpop.f32.mrb[5].mxu0  ;;  %988 = vmatprep.subr.bf16.mxu1 %v975_v51 }
  0xe9   :  { %870 = vmatprep.mubr.f32.mxu1 %v242_v6  ;;  %v182_v10 = vadd.f32 %v1202_v58, %v181_v9 }
  0xea   :  { %v245_v11 = vmax.f32 %v187_v8, 0.0  ;;  %871 = vmatmul.mubr.f32.gmra.mrb[2].mxu1 %v243_v5 }
  0xeb   :  { %v244_v12 = vmax.f32 %v182_v10, 0.0  ;;  %v822_v13 = vpop.f32.mrb[6].mxu0  ;;  %992 = vmatpush3.bf16.msra.mxu1 %v975_v51 }
  0xec   :  { %v197_v14 = vadd.f32 %v822_v13, %v1202_v58  ;;  %v191_v15 = vpop.f32.mrb[7].mxu0  ;;  %989 = vmatprep.subr.bf16.mxu1 %v979_v54 }
  0xed   :  { %873 = vmatprep.mubr.f32.mxu1 %v244_v12  ;;  %v192_v16 = vadd.f32 %v1202_v58, %v191_v15 }
  0xee   :  { %874 = vmatmul.mubr.f32.gmra.mrb[4].mxu1 %v245_v11  ;;  %v247_v17 = vmax.f32 %v197_v14, 0.0 }
  0xef   :  { %v246_v18 = vmax.f32 %v192_v16, 0.0  ;;  %v825_v19 = vpop.f32.mrb[8].mxu0  ;;  %993 = vmatpush3.bf16.msra.mxu1 %v979_v54 }
  0xf0   :  { %v207_v20 = vadd.f32 %v825_v19, %v1202_v58  ;;  %v201_v21 = vpop.f32.mrb[9].mxu0  ;;  %990 = vmatprep.subr.bf16.mxu1 %v983_v57 }
  0xf1   :  { %876 = vmatprep.mubr.f32.mxu1 %v246_v18  ;;  %v202_v22 = vadd.f32 %v1202_v58, %v201_v21 }
  0xf2   :  { %877 = vmatmul.mubr.f32.gmra.mrb[6].mxu1 %v247_v17  ;;  %v249_v23 = vmax.f32 %v207_v20, 0.0 }
  0xf3   :  { %v248_v24 = vmax.f32 %v202_v22, 0.0  ;;  %v828_v25 = vpop.f32.mrb[10].mxu0  ;;  %994 = vmatpush3.bf16.msra.mxu1 %v983_v57 }
  0xf4   :  { %v217_v26 = vadd.f32 %v828_v25, %v1202_v58  ;;  %v211_v27 = vpop.f32.mrb[11].mxu0 }
  0xf5   :  { %879 = vmatprep.mubr.f32.mxu1 %v248_v24  ;;  %v212_v28 = vadd.f32 %v1202_v58, %v211_v27 }
  0xf6   :  { %880 = vmatmul.mubr.f32.gmra.mrb[8].mxu1 %v249_v23  ;;  %v251_v29 = vmax.f32 %v217_v26, 0.0 }
  0xf7   :  { %v250_v30 = vmax.f32 %v212_v28, 0.0  ;;  %v831_v31 = vpop.f32.mrb[12].mxu0  ;;  %v710_v28 = vld [vmem:[%s1258_s4 + $0x2] ss:$0 sm:$0xff]  ;;  %s1020_s4 = smov [#allocation2]  }
  0xf8   :  { %v227_v32 = vadd.f32 %v831_v31, %v1202_v58  ;;  %v221_v33 = vpop.f32.mrb[13].mxu0  ;;  %s684_s6 = sshll.u32 %s1020_s4, 4  ;;  %s685_s6 = int_to_ptr.vmem [resolvable:$true] %s684_s6 }
  0xf9   :  { %882 = vmatprep.mubr.f32.mxu1 %v250_v30  ;;  %v222_v34 = vadd.f32 %v1202_v58, %v221_v33  ;;  %s996_s7 = scalar_lea.vmem %s685_s6, 128  ;;  %p1001_p1 = scmp.lt.s32.totalorder %s685_s6, %s685_s6 }
  0xfa   :  { %883 = vmatmul.mubr.f32.gmra.mrb[10].mxu1 %v251_v29  ;;  %v253_v35 = vmax.f32 %v227_v32, 0.0  ;;  %p997_p0 = scmp.ne.s32.totalorder %s685_s6, %s996_s7  ;;  %p1002_p2 = scmp.lt.s32.totalorder %s996_s7, %s996_s7 }
  0xfb   :  { %v252_v36 = vmax.f32 %v222_v34, 0.0  ;;  %v834_v37 = vpop.f32.mrb[14].mxu0 }
  0xfc   :  { %v237_v38 = vadd.f32 %v834_v37, %v1202_v58  ;;  %v231_v39 = vpop.f32.mrb[15].mxu0  ;;  %p1003_p3 = por %p1002_p2, %p1001_p1 }
  0xfd   :  { %885 = vmatprep.mubr.f32.mxu1 %v252_v36  ;;  %v232_v40 = vadd.f32 %v1202_v58, %v231_v39 }
  0xfe   :  { %886 = vmatmul.mubr.f32.gmra.mrb[12].mxu1 %v253_v35  ;;  %v255_v41 = vmax.f32 %v237_v38, 0.0  ;;  %p1004_p4 = pnand %p1003_p3, %p997_p0 }
  0xff   :  { %v254_v42 = vmax.f32 %v232_v40, 0.0 }
 0x101   :  { %888 = vmatprep.mubr.f32.mxu1 %v254_v42 }
 0x102   :  { %889 = vmatmul.mubr.f32.gmra.mrb[14].mxu1 %v255_v41 }
 0x1b9   :  { %v869_v44 = vpop.f32.mrb[0].mxu1 }
 0x1ba   :  { %v349_v45 = vadd.f32 %v869_v44, %v709_v43  ;;  %v343_v46 = vpop.f32.mrb[1].mxu1 }
 0x1bb   :  { %v344_v47 = vadd.f32 %v709_v43, %v343_v46 }
 0x1bc   :  { %v423_v50 = vmax.f32 %v349_v45, 0.0 }
 0x1bd   :  { %v422_v48 = vmax.f32 %v344_v47, 0.0  ;;  %v872_v49 = vpop.f32.mrb[2].mxu1 }
 0x1be   :  { %v359_v51 = vadd.f32 %v872_v49, %v709_v43  ;;  %v353_v52 = vpop.f32.mrb[3].mxu1 }
 0x1bf   :  { %v354_v53 = vadd.f32 %v709_v43, %v353_v52  ;;  %907 = vmatprep.mubr.msk.f32.mxu0 %vm451_vm1, %v422_v48 }
 0x1c0   :  { %v425_v54 = vmax.f32 %v359_v51, 0.0  ;;  %908 = vmatmul.mubr.msk.f32.vlgmr.msra.gmra.mrb[16].mxu0 %vm451_vm1, %v423_v50 }
 0x1c1   :  { %v424_v55 = vmax.f32 %v354_v53, 0.0  ;;  %v875_v56 = vpop.f32.mrb[4].mxu1 }
 0x1c2   :  { %v369_v57 = vadd.f32 %v875_v56, %v709_v43  ;;  %v363_v58 = vpop.f32.mrb[5].mxu1 }
 0x1c3   :  { %910 = vmatprep.mubr.msk.f32.mxu0 %vm451_vm1, %v424_v55  ;;  %v364_v59 = vadd.f32 %v709_v43, %v363_v58 }
 0x1c4   :  { %v427_v60 = vmax.f32 %v369_v57, 0.0  ;;  %911 = vmatmul.mubr.msk.f32.gmra.mrb[18].mxu0 %vm451_vm1, %v425_v54 }
 0x1c5   :  { %v426_v61 = vmax.f32 %v364_v59, 0.0  ;;  %v878_v62 = vpop.f32.mrb[6].mxu1 }
 0x1c6   :  { %v379_v63 = vadd.f32 %v878_v62, %v709_v43  ;;  %v373_v0 = vpop.f32.mrb[7].mxu1 }
 0x1c7   :  { %913 = vmatprep.mubr.msk.f32.mxu0 %vm451_vm1, %v426_v61  ;;  %v374_v1 = vadd.f32 %v709_v43, %v373_v0 }
 0x1c8   :  { %914 = vmatmul.mubr.msk.f32.gmra.mrb[20].mxu0 %vm451_vm1, %v427_v60  ;;  %v429_v2 = vmax.f32 %v379_v63, 0.0 }
 0x1c9   :  { %v428_v3 = vmax.f32 %v374_v1, 0.0  ;;  %v881_v4 = vpop.f32.mrb[8].mxu1 }
 0x1ca   :  { %v389_v5 = vadd.f32 %v881_v4, %v709_v43  ;;  %v383_v6 = vpop.f32.mrb[9].mxu1 }
 0x1cb   :  { %916 = vmatprep.mubr.msk.f32.mxu0 %vm451_vm1, %v428_v3  ;;  %v384_v7 = vadd.f32 %v709_v43, %v383_v6 }
 0x1cc   :  { %917 = vmatmul.mubr.msk.f32.gmra.mrb[22].mxu0 %vm451_vm1, %v429_v2  ;;  %v431_v8 = vmax.f32 %v389_v5, 0.0 }
 0x1cd   :  { %v430_v9 = vmax.f32 %v384_v7, 0.0  ;;  %v884_v10 = vpop.f32.mrb[10].mxu1 }
 0x1ce   :  { %v399_v11 = vadd.f32 %v884_v10, %v709_v43  ;;  %v393_v12 = vpop.f32.mrb[11].mxu1 }
 0x1cf   :  { %919 = vmatprep.mubr.msk.f32.mxu0 %vm451_vm1, %v430_v9  ;;  %v394_v13 = vadd.f32 %v709_v43, %v393_v12 }
 0x1d0   :  { %920 = vmatmul.mubr.msk.f32.gmra.mrb[24].mxu0 %vm451_vm1, %v431_v8  ;;  %v433_v14 = vmax.f32 %v399_v11, 0.0 }
 0x1d1   :  { %v432_v15 = vmax.f32 %v394_v13, 0.0  ;;  %v887_v16 = vpop.f32.mrb[12].mxu1 }
 0x1d2   :  { %v409_v17 = vadd.f32 %v887_v16, %v709_v43  ;;  %v403_v18 = vpop.f32.mrb[13].mxu1 }
 0x1d3   :  { %922 = vmatprep.mubr.msk.f32.mxu0 %vm451_vm1, %v432_v15  ;;  %v404_v19 = vadd.f32 %v709_v43, %v403_v18 }
 0x1d4   :  { %923 = vmatmul.mubr.msk.f32.gmra.mrb[26].mxu0 %vm451_vm1, %v433_v14  ;;  %v435_v20 = vmax.f32 %v409_v17, 0.0 }
 0x1d5   :  { %v434_v21 = vmax.f32 %v404_v19, 0.0  ;;  %v890_v22 = vpop.f32.mrb[14].mxu1 }
 0x1d6   :  { %v419_v23 = vadd.f32 %v890_v22, %v709_v43  ;;  %v413_v24 = vpop.f32.mrb[15].mxu1 }
 0x1d7   :  { %925 = vmatprep.mubr.msk.f32.mxu0 %vm451_vm1, %v434_v21  ;;  %v414_v25 = vadd.f32 %v709_v43, %v413_v24 }
 0x1d8   :  { %926 = vmatmul.mubr.msk.f32.gmra.mrb[28].mxu0 %vm451_vm1, %v435_v20  ;;  %v437_v26 = vmax.f32 %v419_v23, 0.0 }
 0x1d9   :  { %v436_v27 = vmax.f32 %v414_v25, 0.0 }
 0x1db   :  { %928 = vmatprep.mubr.msk.f32.mxu1 %vm451_vm1, %v436_v27 }
 0x1dc   :  { %929 = vmatmul.mubr.msk.f32.vlgmr.msra.gmra.mrb[16].mxu1 %vm451_vm1, %v437_v26 }
 0x293   :  { %v909_v29 = vpop.f32.mrb[16].mxu0 }
 0x294   :  { %v566_v30 = vpop.f32.mrb[17].mxu0  ;;  %v572_v34 = vadd.f32 %v909_v29, %v710_v28 }
 0x295   :  { %v567_v31 = vadd.f32 %v710_v28, %v566_v30 }
 0x297   :  { %v912_v32 = vpop.f32.mrb[18].mxu0  ;;  %645 = vxpose.xlu0.b32.start [1/16] (narrow) %v567_v31, 8 }
 0x298   :  { %v576_v33 = vpop.f32.mrb[19].mxu0  ;;  %v582_v40 = vadd.f32 %v912_v32, %v710_v28 }
 0x299   :  { %v577_v37 = vadd.f32 %v710_v28, %v576_v33 }
 0x29b   :  { %646 = vxpose.xlu0.b32.cont [2/16] (narrow) %v572_v34, 8  ;;  %v915_v35 = vpop.f32.mrb[20].mxu0 }
 0x29c   :  { %v586_v36 = vpop.f32.mrb[21].mxu0  ;;  %v592_v46 = vadd.f32 %v915_v35, %v710_v28 }
 0x29d   :  { %v587_v43 = vadd.f32 %v710_v28, %v586_v36 }
 0x29f   :  { %647 = vxpose.xlu0.b32.cont [3/16] (narrow) %v577_v37, 8  ;;  %v918_v38 = vpop.f32.mrb[22].mxu0 }
 0x2a0   :  { %v596_v39 = vpop.f32.mrb[23].mxu0  ;;  %v602_v52 = vadd.f32 %v918_v38, %v710_v28 }
 0x2a1   :  { %v597_v49 = vadd.f32 %v710_v28, %v596_v39 }
 0x2a3   :  { %648 = vxpose.xlu0.b32.cont [4/16] (narrow) %v582_v40, 8  ;;  %v921_v41 = vpop.f32.mrb[24].mxu0 }
 0x2a4   :  { %v606_v42 = vpop.f32.mrb[25].mxu0  ;;  %v612_v54 = vadd.f32 %v921_v41, %v710_v28 }
 0x2a5   :  { %v607_v53 = vadd.f32 %v710_v28, %v606_v42 }
 0x2a7   :  { %649 = vxpose.xlu0.b32.cont [5/16] (narrow) %v587_v43, 8  ;;  %v924_v44 = vpop.f32.mrb[26].mxu0 }
 0x2a8   :  { %v616_v45 = vpop.f32.mrb[27].mxu0  ;;  %v622_v56 = vadd.f32 %v924_v44, %v710_v28 }
 0x2a9   :  { %v617_v55 = vadd.f32 %v710_v28, %v616_v45 }
 0x2ab   :  { %650 = vxpose.xlu0.b32.cont [6/16] (narrow) %v592_v46, 8  ;;  %v927_v47 = vpop.f32.mrb[28].mxu0 }
 0x2ac   :  { %v626_v48 = vpop.f32.mrb[29].mxu0  ;;  %v632_v58 = vadd.f32 %v927_v47, %v710_v28 }
 0x2ad   :  { %v627_v57 = vadd.f32 %v710_v28, %v626_v48 }
 0x2af   :  { %651 = vxpose.xlu0.b32.cont [7/16] (narrow) %v597_v49, 8  ;;  %v930_v50 = vpop.f32.mrb[16].mxu1 }
 0x2b0   :  { %v636_v51 = vpop.f32.mrb[17].mxu1  ;;  %v642_v60 = vadd.f32 %v930_v50, %v710_v28 }
 0x2b1   :  { %v637_v59 = vadd.f32 %v710_v28, %v636_v51 }
 0x2b3   :  { %652 = vxpose.xlu0.b32.cont [8/16] (narrow) %v602_v52, 8 }
 0x2b7   :  { %653 = vxpose.xlu0.b32.cont [9/16] (narrow) %v607_v53, 8 }
 0x2bb   :  { %654 = vxpose.xlu0.b32.cont [10/16] (narrow) %v612_v54, 8 }
 0x2bf   :  { %655 = vxpose.xlu0.b32.cont [11/16] (narrow) %v617_v55, 8 }
 0x2c3   :  { %656 = vxpose.xlu0.b32.cont [12/16] (narrow) %v622_v56, 8 }
 0x2c7   :  { %657 = vxpose.xlu0.b32.cont [13/16] (narrow) %v627_v57, 8 }
 0x2cb   :  { %658 = vxpose.xlu0.b32.cont [14/16] (narrow) %v632_v58, 8 }
 0x2cf   :  { %659 = vxpose.xlu0.b32.cont [15/16] (narrow) %v637_v59, 8 }
 0x2d3   :  { %660 = vxpose.xlu0.b32.end [16/16] (narrow) %v642_v60, 8 }
 0x317   :  { %v661_v61 = vpop.trf.xlu0 }
 0x318   :  { %677 = vst [vmem:[#allocation2] sm:$0xff] %v661_v61 }
 0x319   :  { %1007 = shalt.err (!%p1004_p4)
}
 0x31a   :  { %s1008_s9 = scalar_lea.hbm %s1259_s5, 128 }
 0x31b   :  { %p1009_p5 = scmp.ne.s32.totalorder %s1259_s5, %s1008_s9  ;;  %p1012_p6 = scmp.lt.u32.totalorder %s1008_s9, %s1259_s5 }
 0x31d   :  { %p1014_p7 = pnand %p1012_p6, %p1009_p5 }
 0x31f   :  { %1017 = shalt.err (!%p1014_p7)
}
 0x320   :  { %687 = dma.vmem_to_hbm [thread:$0]  %s685_s6, 128, %s1259_s5, [#allocation3]  }
 0x321   :  { %1018 = dma.done.wait [#allocation3], 128  }
 0x322   :  { %1019 = vsyncadd [#allocation3], 4294967168 }
 0x323   :  { %691 = vsyncpa [#allocation3], 1 }

</bundles_post_ra>
